<compile_context>
chip_gen: v7x
topology: tpu7x:2x2x1
jax: 0.10.0
libtpu: 0.0.40
codegen_flags: <defaults>
</compile_context>

<pallas_src>
import functools

import jax
import jax.numpy as jnp
from jax.experimental import pallas as pl
from jax.experimental.pallas import tpu as pltpu


def _round_up(x, m):
    return ((x + m - 1) // m) * m


def _num_tensorcores():
    """2 TensorCores per chip on v7x; 1 on v5e/v6e (and as a safe default)."""
    try:
        kind = jax.devices()[0].device_kind.lower()
    except Exception:
        return 1
    if ("v7" in kind) or ("7x" in kind):
        return 2
    return 1


def _pick_tile_rows(rows, cap, num_tc):
    """Pick a row tile (multiple of 8, or == rows) that amortizes per-step overhead.

    Single grid step when everything fits one tile on a single-TC part (v5e/v6e);
    force >=2 grid steps only on 2-TC parts (v7x) when there is enough work.
    Prefers tiles that divide `rows` exactly (no padding -> no post-kernel copy).
    """
    cap = max(8, cap)
    min_steps = 2 if (num_tc >= 2 and rows >= 32) else 1
    steps = max(min_steps, -(-rows // cap))
    if steps == 1:
        return rows  # full-dim block: no (8,) divisibility constraint, no padding
    base = -(-rows // steps)
    tile = _round_up(base, 8)
    for cand in range(tile, min(cap, rows) + 1, 8):
        if rows % cand == 0 and (rows // cand) >= min_steps:
            return cand  # exact divisor: no padding, no post-kernel slice copy
    return tile


def _linear_kernel(x_ref, w_ref, b_ref, o_ref):
    # x_ref: (tr, Kf) bf16, w_ref: (Kf, Df) bf16 (resident), b_ref: (1, Df) f32
    # f32 accumulation + f32 bias add; final store in o_ref.dtype (bf16).
    acc = jnp.dot(x_ref[...], w_ref[...], preferred_element_type=jnp.float32)
    o_ref[...] = (acc + b_ref[...]).astype(o_ref.dtype)


def pallas_linear(x2d, w_eff, b_eff, *, tile_rows):
    """x2d: (R, Kf), w_eff: (Kf, Df), b_eff: (1, Df) -> (R, Df) in x2d.dtype. R % tile_rows == 0."""
    R, Kf = x2d.shape
    Kf2, Df = w_eff.shape
    assert Kf == Kf2 and R % tile_rows == 0

    out_dtype = x2d.dtype  # bf16 output: halves HBM write traffic on a mem-bound kernel
    in_sz = jnp.dtype(x2d.dtype).itemsize
    w_sz = jnp.dtype(w_eff.dtype).itemsize
    out_sz = jnp.dtype(out_dtype).itemsize

    # double-buffered x and out tiles + (double-buffered but constant) weight/bias,
    # +2x headroom, 8 MiB floor, 48 MiB ceiling (fits inside v7x's 64 MiB per-TC VMEM).
    vmem_bytes = (2 * tile_rows * Kf * in_sz
                  + 2 * tile_rows * Df * out_sz
                  + 2 * Kf * Df * w_sz
                  + 2 * Df * 4)
    vmem_limit = int(min(max(8 << 20, 2 * vmem_bytes), 48 << 20))

    cost = pl.CostEstimate(
        flops=2 * R * Kf * Df,
        transcendentals=0,
        bytes_accessed=R * Kf * in_sz + Kf * Df * w_sz + Df * 4 + R * Df * out_sz,
    )

    return pl.pallas_call(
        _linear_kernel,
        out_shape=jax.ShapeDtypeStruct((R, Df), out_dtype),
        grid_spec=pltpu.PrefetchScalarGridSpec(
            num_scalar_prefetch=0,
            grid=(R // tile_rows,),
            in_specs=[
                pl.BlockSpec((tile_rows, Kf), lambda i: (i, 0)),
                pl.BlockSpec((Kf, Df), lambda i: (0, 0)),   # constant block -> stays resident
                pl.BlockSpec((1, Df), lambda i: (0, 0)),
            ],
            out_specs=pl.BlockSpec((tile_rows, Df), lambda i: (i, 0)),
        ),
        compiler_params=pltpu.CompilerParams(
            dimension_semantics=("parallel",),
            vmem_limit_bytes=vmem_limit,
        ),
        cost_estimate=cost,
    )(x2d, w_eff, b_eff)


def _pick_group(K, D, *, max_kf=512, max_df=1024):
    """Smallest fold factor g with g*K % 128 == 0 AND g*D % 128 == 0 (lane-dense input
    and output, deeper MXU contraction). Fallback: lane-dense output only; else g=1."""
    df_only = 1
    for g in (1, 2, 4, 8, 16, 32):
        if g * K > max_kf or g * D > max_df:
            break
        if (g * D) % 128 == 0 and (g * K) % 128 == 0:
            return g
        if (g * D) % 128 == 0 and df_only == 1:
            df_only = g
    return df_only


def prepare_patch_encoder(weight, bias, *, compute_dtype=jnp.bfloat16):
    """One-time parameter prep from PyTorch-layout weight (D, K), bias (D,).

    Returns (w_eff, b_eff, group): w_eff = blockdiag(W^T x group). group is picked so the
    kernel's contraction dim group*K and output dim group*D are multiples of 128 when possible.
    """
    D, K = weight.shape
    group = _pick_group(K, D)

    wt = weight.T.astype(jnp.float32)  # (K, D) -- one-time transpose, not per-call
    if group == 1:
        w_eff = wt
        b_eff = bias.reshape(1, D)
    else:
        w_eff = jnp.kron(jnp.eye(group, dtype=jnp.float32), wt)     # (group*K, group*D)
        b_eff = jnp.tile(bias, group).reshape(1, group * D)
    return w_eff.astype(compute_dtype), b_eff.astype(jnp.float32), group


@functools.partial(jax.jit,
                   static_argnames=("patch_size", "group", "tile_rows", "compute_dtype"))
def patch_encoder_forward(x, w_eff, b_eff, *, patch_size=2, group=1, tile_rows=1024,
                          compute_dtype=jnp.bfloat16):
    """Matches PyTorch PatchEncoder.forward: x (B,C,H,W) f32 -> (B, N, model_dim) bf16."""
    B, C, H, W = x.shape
    p = patch_size
    K = C * p * p
    N = (H // p) * (W // p)
    M = B * N
    Df = w_eff.shape[1]
    D = Df // group

    # Cast to bf16 BEFORE patchify so the materialized glue intermediate is half-width.
    x = x.astype(compute_dtype)

    # Patchify (XLA glue, fused with the pad below inside this jit).
    xp = x.reshape(B, C, H // p, p, W // p, p)
    xp = jnp.transpose(xp, (0, 2, 4, 1, 3, 5))
    patches = xp.reshape(M, K)

    # Fold `group` patches per matmul row; pad rows to a tile multiple (ragged M handled here).
    num_tc = _num_tensorcores()
    rows = -(-M // group)
    tr = _pick_tile_rows(rows, tile_rows, num_tc)
    rows_pad = -(-rows // tr) * tr
    M_pad = rows_pad * group
    if M_pad != M:
        patches = jnp.pad(patches, ((0, M_pad - M), (0, 0)))
    x_fold = patches.reshape(rows_pad, group * K)

    out = pallas_linear(x_fold, w_eff, b_eff, tile_rows=tr)   # (rows_pad, group*D) bf16
    out = out.reshape(M_pad, D)
    if M_pad != M:
        out = out[:M]
    return out.reshape(B, N, D)


def init_params(key, latent_dim, model_dim, patch_size=2):
    """Deterministic nn.Linear-style init: U(-1/sqrt(fan_in), 1/sqrt(fan_in)); PyTorch (D, K) layout."""
    fan_in = latent_dim * patch_size * patch_size
    kw, kb = jax.random.split(key)
    bound = 1.0 / jnp.sqrt(jnp.float32(fan_in))
    weight = jax.random.uniform(kw, (model_dim, fan_in), jnp.float32, -bound, bound)
    bias = jax.random.uniform(kb, (model_dim,), jnp.float32, -bound, bound)
    return weight, bias


if __name__ == "__main__":
    # Small shapes consistent with the module: B=2, C(latent_dim)=4, H=W=16,
    # patch_size=2 -> N=64 patches of dim 16, model_dim=32.
    B, C, H, W = 2, 4, 16, 16
    patch_size = 2
    model_dim = 32

    key = jax.random.PRNGKey(0)
    kx, kp = jax.random.split(key)
    x = jax.random.normal(kx, (B, C, H, W), jnp.float32)
    weight, bias = init_params(kp, C, model_dim, patch_size)

    w_eff, b_eff, group = prepare_patch_encoder(weight, bias)
    out = patch_encoder_forward(x, w_eff, b_eff, patch_size=patch_size, group=group)
    out = jax.block_until_ready(out)

    # References: "exact" (same bf16 input/weight rounding, f32 accumulate) and pure-f32 math.
    p = patch_size
    ref_patches = jnp.transpose(
        x.reshape(B, C, H // p, p, W // p, p), (0, 2, 4, 1, 3, 5)
    ).reshape(B, -1, C * p * p)
    ref_f32 = ref_patches @ weight.T + bias
    ref_bf16 = (ref_patches.astype(jnp.bfloat16).astype(jnp.float32)
                @ weight.astype(jnp.bfloat16).astype(jnp.float32).T + bias)

    N = (H // p) * (W // p)
    assert out.shape == (B, N, model_dim), out.shape
    assert out.dtype == jnp.bfloat16, out.dtype
    out_f32 = out.astype(jnp.float32)
    # bf16 output store adds <= ~0.4% relative rounding on top of the f32-accumulated result.
    assert jnp.allclose(out_f32, ref_bf16, atol=2e-2, rtol=2e-2), \
        float(jnp.max(jnp.abs(out_f32 - ref_bf16)))
    assert jnp.allclose(out_f32, ref_f32, atol=6e-2, rtol=6e-2), \
        float(jnp.max(jnp.abs(out_f32 - ref_f32)))
    print("KERNEL_OK")
</pallas_src>

<mosaic_0001>
module attributes {stable_mosaic.version = 11 : i64} {
  func.func @_linear_kernel(%arg0: i32, %arg1: memref<16x128xbf16, #tpu.memory_space<vmem>>, %arg2: memref<128x256xbf16, #tpu.memory_space<vmem>>, %arg3: memref<1x256xf32, #tpu.memory_space<vmem>>, %arg4: memref<16x256xbf16, #tpu.memory_space<vmem>>) attributes {dimension_semantics = [#tpu.dimension_semantics<parallel>], iteration_bounds = array<i64: 1>, scalar_prefetch = 0 : i64, scratch_operands = 0 : i64, tpu.core_type = #tpu.core_type<tc>, window_params = [{transform_indices = @transform_0, window_bounds = array<i64: 16, 128>}, {pipeline_mode = #tpu.pipeline_mode<synchronous>, transform_indices = @transform_1, window_bounds = array<i64: 128, 256>}, {pipeline_mode = #tpu.pipeline_mode<synchronous>, transform_indices = @transform_2, window_bounds = array<i64: 1, 256>}, {transform_indices = @transform_3, window_bounds = array<i64: 16, 256>}]} {
    %c0 = arith.constant 0 : index
    %c0_0 = arith.constant 0 : index
    %0 = vector.load %arg1[%c0, %c0_0] : memref<16x128xbf16, #tpu.memory_space<vmem>>, vector<16x128xbf16>
    %c0_1 = arith.constant 0 : index
    %c0_2 = arith.constant 0 : index
    %1 = vector.load %arg2[%c0_1, %c0_2] : memref<128x256xbf16, #tpu.memory_space<vmem>>, vector<128x256xbf16>
    %cst = arith.constant dense<0.000000e+00> : vector<16x256xf32>
    %2 = tpu.matmul %0, %1, %cst {dimension_numbers = #tpu.dot_dimension_numbers<[1], [0], [0], [1], [0, 0, 1, 1], [], []>} : vector<16x128xbf16>, vector<128x256xbf16>, vector<16x256xf32> -> vector<16x256xf32>
    %c0_3 = arith.constant 0 : index
    %c0_4 = arith.constant 0 : index
    %3 = vector.load %arg3[%c0_3, %c0_4] : memref<1x256xf32, #tpu.memory_space<vmem>>, vector<1x256xf32>
    %4 = vector.broadcast %3 : vector<1x256xf32> to vector<16x256xf32>
    %5 = arith.addf %2, %4 : vector<16x256xf32>
    %6 = arith.truncf %5 : vector<16x256xf32> to vector<16x256xbf16>
    %c0_5 = arith.constant 0 : index
    %c0_6 = arith.constant 0 : index
    %7 = vector.load %arg4[%c0_5, %c0_6] : memref<16x256xbf16, #tpu.memory_space<vmem>>, vector<16x256xbf16>
    tpu.vector_store %arg4[%c0_5, %c0_6], %6 {strides = array<i32>} : memref<16x256xbf16, #tpu.memory_space<vmem>>, vector<16x256xbf16>,
    return
  }
  func.func @transform_0(%arg0: i32) -> (i32, i32) {
    %c0_i32 = arith.constant 0 : i32
    %c0_i32_0 = arith.constant 0 : i32
    return %arg0, %c0_i32 : i32, i32
  }
  func.func @transform_1(%arg0: i32) -> (i32, i32) {
    %c0_i32 = arith.constant 0 : i32
    %c0_i32_0 = arith.constant 0 : i32
    %c0_i32_1 = arith.constant 0 : i32
    return %c0_i32, %c0_i32_0 : i32, i32
  }
  func.func @transform_2(%arg0: i32) -> (i32, i32) {
    %c0_i32 = arith.constant 0 : i32
    %c0_i32_0 = arith.constant 0 : i32
    %c0_i32_1 = arith.constant 0 : i32
    return %c0_i32, %c0_i32_0 : i32, i32
  }
  func.func @transform_3(%arg0: i32) -> (i32, i32) {
    %c0_i32 = arith.constant 0 : i32
    %c0_i32_0 = arith.constant 0 : i32
    return %arg0, %c0_i32 : i32, i32
  }
}

</mosaic_0001>

<bundles_post_ra>
// kernel: patch_encoder_forward.1
= control target key start
LH: loop header
LB: loop body
LE: loop exit
PB: predicated region body
PF: predicated region fallthrough
CT: control target
= control target key end

     0   :  { %v239_v1 = vmov 0   ;;  %v35_v18 = vlaneseq  ;;  %s320_s1 = inlined_call_operand.vmem [shape: bf16[128,256], index: 1, kind: input, shape index: {}]   ;;  %s321_s0 = inlined_call_operand.vmem [shape: bf16[16,128], index: 0, kind: input, shape index: {}]   ;;  %s322_s2 = inlined_call_operand.vmem [shape: f32[1,256], index: 2, kind: input, shape index: {}]   ;;  %s323_s3 = inlined_call_operand.vmem [shape: bf16[16,256], index: 3, kind: output, shape index: {}]  }
   0x1   :  { %v214_v0 = vld [vmem:[%s320_s1 + $0x4] ss:$8 sps:$4 sm:$0xff]   ;;  %163 = vmatprep.mubr.bf16.mxu0 %v239_v1  ;;  %v216_v2 = vld [vmem:[%s320_s1] ss:$8 sps:$4 sm:$0xff]   ;;  %v217_v3 = vld [vmem:[%s320_s1 + $0x14] ss:$8 sps:$4 sm:$0xff]  }
   0x2   :  { %131 = vmatprep.subr.bf16.mxu0 %v214_v0  ;;  %v219_v4 = vld [vmem:[%s320_s1 + $0x10] ss:$8 sps:$4 sm:$0xff]   ;;  %v220_v5 = vld [vmem:[%s320_s1 + $0x24] ss:$8 sps:$4 sm:$0xff]   ;;  %v222_v6 = vld [vmem:[%s320_s1 + $0x20] ss:$8 sps:$4 sm:$0xff]  }
   0x3   :  { %132 = vmatpush1.bf16.msra.mxu0 %v216_v2  ;;  %v223_v7 = vld [vmem:[%s320_s1 + $0x34] ss:$8 sps:$4 sm:$0xff]   ;;  %v225_v8 = vld [vmem:[%s320_s1 + $0x30] ss:$8 sps:$4 sm:$0xff]   ;;  %v226_v9 = vld [vmem:[%s320_s1 + $0x44] ss:$8 sps:$4 sm:$0xff]  }
   0x4   :  { %133 = vmatprep.subr.bf16.mxu0 %v217_v3  ;;  %v228_v10 = vld [vmem:[%s320_s1 + $0x40] ss:$8 sps:$4 sm:$0xff]   ;;  %v229_v11 = vld [vmem:[%s320_s1 + $0x54] ss:$8 sps:$4 sm:$0xff]   ;;  %v231_v12 = vld [vmem:[%s320_s1 + $0x50] ss:$8 sps:$4 sm:$0xff]  }
   0x5   :  { %v232_v13 = vld [vmem:[%s320_s1 + $0x64] ss:$8 sps:$4 sm:$0xff]   ;;  %v234_v14 = vld [vmem:[%s320_s1 + $0x60] ss:$8 sps:$4 sm:$0xff]   ;;  %v235_v15 = vld [vmem:[%s320_s1 + $0x74] ss:$8 sps:$4 sm:$0xff]  }
   0x6   :  { %v237_v16 = vld [vmem:[%s320_s1 + $0x70] ss:$8 sps:$4 sm:$0xff]   ;;  %v238_v17 = vld [vmem:[%s321_s0] sm:$0xff]   ;;  %v36_v19 = vshrl.u32 %v35_v18, 7 }
   0x7   :  { %134 = vmatpush1.bf16.msra.mxu0 %v219_v4  ;;  %v33_v21 = vld [vmem:[%s322_s2] sm:$0x3] }
   0x8   :  { %135 = vmatprep.subr.bf16.mxu0 %v220_v5  ;;  %v37_v20 = vsub.s32 0, %v36_v19  ;;  %v41_v22 = vsub.s32 1, %v36_v19 }
   0xa   :  { %v38_v23 = vrot.slane %v33_v21, %v37_v20  ;;  %v42_v24 = vrot.slane %v33_v21, %v41_v22 }
   0xb   :  { %136 = vmatpush1.bf16.msra.mxu0 %v222_v6 }
   0xc   :  { %137 = vmatprep.subr.bf16.mxu0 %v223_v7 }
   0xf   :  { %138 = vmatpush1.bf16.msra.mxu0 %v225_v8 }
  0x10   :  { %139 = vmatprep.subr.bf16.mxu0 %v226_v9 }
  0x13   :  { %140 = vmatpush1.bf16.msra.mxu0 %v228_v10 }
  0x14   :  { %141 = vmatprep.subr.bf16.mxu0 %v229_v11 }
  0x17   :  { %142 = vmatpush1.bf16.msra.mxu0 %v231_v12 }
  0x18   :  { %143 = vmatprep.subr.bf16.mxu0 %v232_v13 }
  0x1b   :  { %144 = vmatpush1.bf16.msra.mxu0 %v234_v14 }
  0x1c   :  { %145 = vmatprep.subr.bf16.mxu0 %v235_v15 }
  0x1f   :  { %146 = vmatpush1.bf16.msra.mxu0 %v237_v16 }
  0x22   :  { %164 = vmatmul.mubr.bf16.vlgmr.msra.gmra.mrb[0].mxu0 %v238_v17 }
  0xf5   :  { %v165_v25 = vpop.f32.mrb[0].mxu0 }
  0xf6   :  { %v166_v26 = vadd.f32 %v165_v25, %v38_v23  ;;  %v167_v27 = vpop.f32.mrb[1].mxu0 }
  0xf7   :  { %v168_v28 = vadd.f32 %v167_v27, %v42_v24  ;;  %v169_v29 = vpop.f32.mrb[2].mxu0 }
  0xf8   :  { %v170_v30 = vadd.f32 %v169_v29, %v38_v23  ;;  %v171_v31 = vpop.f32.mrb[3].mxu0 }
  0xf9   :  { %v211_v32 = vpack.c.bf16 %v168_v28, %v166_v26  ;;  %v172_v33 = vadd.f32 %v171_v31, %v42_v24 }
  0xfb   :  { %186 = vst [vmem:[%s323_s3] sm:$0xff] %v211_v32  ;;  %v212_v34 = vpack.c.bf16 %v172_v33, %v170_v30 }
  0xfd   :  { %187 = vst [vmem:[%s323_s3 + $0x8] sm:$0xff] %v212_v34 }

</bundles_post_ra>
